<compile_context>
chip_gen: v7x
topology: tpu7x:2x2x1
jax: 0.10.0
libtpu: 0.0.40
codegen_flags: <defaults>
</compile_context>

<pallas_src>
import math

import jax
import jax.numpy as jnp
from jax.experimental import pallas as pl
from jax.experimental.pallas import tpu as pltpu

_LANE = 128                               # lane width (preferred last dim of the slab)
_TARGET_BLOCK_BYTES = 2 * 1024 * 1024     # ~2 MiB HBM per input per grid step
_VMEM_LIMIT_BYTES = 32 * 1024 * 1024      # safe on v5e/v6e/v7x
_SUBLANE_MULT = 32                        # row multiple that is sublane-aligned for f32/bf16/int8


# --------------------------------------------------------------------------- #
# Per-element contributions (cast to f32 inside the kernel, mask only if given)
# --------------------------------------------------------------------------- #
def _log_contrib(vals, mask):
    x = vals[0].astype(jnp.float32)
    if mask is not None:
        # Neutral value substituted BEFORE the log: masked (stale) lanes contribute
        # exactly 0 and can never be -inf / NaN.
        x = jnp.where(mask, x, 1.0)
    return jnp.log(x)


def _sse_contrib(vals, mask):
    d = vals[0].astype(jnp.float32) - vals[1].astype(jnp.float32)
    if mask is not None:
        d = jnp.where(mask, d, 0.0)
    return d * d


# --------------------------------------------------------------------------- #
# Generic 2-D streaming-sum kernel: sum(contrib(inputs)) over an (R, C) slab
# --------------------------------------------------------------------------- #
def _make_reduce_kernel(contrib_fn, *, n_inputs, tile_rows, n_cols, total_rows, steps):
    # Valid rows in the last block (trace-time constant).
    rem = total_rows - (steps - 1) * tile_rows
    full_last = rem == tile_rows

    def kernel(*refs):
        in_refs = refs[:n_inputs]
        o_ref = refs[n_inputs]                 # (1, C) resident column-sum accumulator
        i = pl.program_id(0)

        vals = tuple(r[...] for r in in_refs)  # stream block in original dtype

        @pl.when(i == 0)
        def _init():
            o_ref[...] = jnp.zeros_like(o_ref)

        def accum(mask):
            # Per-step column reduce (sublane axis) into the resident output row:
            # no full-tile accumulator RMW, only ~C/128 vregs of output traffic/step.
            o_ref[...] += jnp.sum(contrib_fn(vals, mask), axis=0, keepdims=True)

        if full_last:
            accum(None)                         # grid divides evenly: never mask
        else:
            @pl.when(i != steps - 1)
            def _interior():
                accum(None)                     # interior blocks: unmasked hot loop

            @pl.when(i == steps - 1)
            def _tail():
                rows = jax.lax.broadcasted_iota(jnp.int32, (tile_rows, n_cols), 0)
                accum(rows < rem)               # only the partial last block is masked

    return kernel


def _reduce_2d(contrib_fn, arrays, *, flops_per_elem, transcendentals_per_elem=0):
    """sum(contrib_fn(arrays)) where every array is the same (R, C) 2-D view."""
    rows, cols = arrays[0].shape

    bytes_per_row = cols * max(a.dtype.itemsize for a in arrays)
    tile_rows = _TARGET_BLOCK_BYTES // max(bytes_per_row, 1)
    if tile_rows >= rows:
        tile_rows = rows                                   # single full block
    else:
        tile_rows = max(_SUBLANE_MULT, tile_rows - tile_rows % _SUBLANE_MULT)
        tile_rows = min(tile_rows, rows)
    steps = -(-rows // tile_rows)

    kernel = _make_reduce_kernel(
        contrib_fn, n_inputs=len(arrays), tile_rows=tile_rows,
        n_cols=cols, total_rows=rows, steps=steps)

    n_elems = rows * cols
    cost = pl.CostEstimate(
        flops=int(flops_per_elem * n_elems),
        transcendentals=int(transcendentals_per_elem * n_elems),
        bytes_accessed=int(sum(a.size * a.dtype.itemsize for a in arrays) + cols * 4),
    )

    col_sums = pl.pallas_call(
        kernel,
        out_shape=jax.ShapeDtypeStruct((1, cols), jnp.float32),
        grid_spec=pltpu.PrefetchScalarGridSpec(
            num_scalar_prefetch=0,
            grid=(steps,),
            in_specs=[pl.BlockSpec((tile_rows, cols), lambda i: (i, 0))
                      for _ in arrays],
            out_specs=pl.BlockSpec((1, cols), lambda i: (0, 0)),
        ),
        compiler_params=pltpu.CompilerParams(
            dimension_semantics=("arbitrary",),
            vmem_limit_bytes=_VMEM_LIMIT_BYTES,
        ),
        cost_estimate=cost,
    )(*arrays)

    # Final tiny (<= cols) reduce in XLA.
    return jnp.sum(col_sums)


# --------------------------------------------------------------------------- #
# Free 2-D views (no casts, no pads, no copies)
# --------------------------------------------------------------------------- #
def _as_rows(x):
    """View x as a 2-D (R, C) slab via a free row-major reshape.

    Prefers a 100% lane-dense C=128 view; if the element count does not divide
    128, keeps the original trailing dim as the lane axis (full-dim block) so
    no padding copy is ever made.
    """
    n = x.size
    if n % _LANE == 0:
        return x.reshape(n // _LANE, _LANE)
    cols = x.shape[-1]
    return x.reshape(n // cols, cols)


# --------------------------------------------------------------------------- #
# Public reductions
# --------------------------------------------------------------------------- #
def pallas_log_sum_fused(tensors):
    """sum_i sum(log(tensors[i])) in a single pallas_call.

    Multiple tensors are flattened + concatenated (they are tiny latent
    likelihoods, so this copy is cheap and replaces N separate launches); the
    <=127-element lane pad uses 1.0 so log(pad) == 0.
    """
    if len(tensors) == 1:
        slab = _as_rows(tensors[0])
    else:
        flats = [t.reshape(-1) for t in tensors]
        n = sum(f.shape[0] for f in flats)
        pad = (-n) % _LANE
        if pad:
            flats.append(jnp.ones((pad,), dtype=flats[0].dtype))
        slab = jnp.concatenate(flats).reshape(-1, _LANE)
    return _reduce_2d(_log_contrib, [slab],
                      flops_per_elem=1, transcendentals_per_elem=1)


def pallas_sse(a, b):
    """sum((a - b)^2) via a single pallas_call."""
    return _reduce_2d(_sse_contrib, [_as_rows(a), _as_rows(b)], flops_per_elem=3)


def rate_distortion_loss(output, target, lmbda=0.01):
    """JAX/Pallas equivalent of RateDistortionLoss.forward."""
    N, _, H, W = target.shape
    num_pixels = N * H * W

    likelihoods = list(output["likelihoods"].values())
    if likelihoods:
        # sum_i sum(log(l_i)) / (-ln2 * num_pixels)  ==  sum_i [sum(log(l_i)) / ...]
        bpp_loss = pallas_log_sum_fused(likelihoods) / (-math.log(2) * num_pixels)
    else:
        bpp_loss = jnp.float32(0.0)

    x_hat = output["x_hat"]
    mse_loss = pallas_sse(x_hat, target) / jnp.float32(x_hat.size)

    loss = lmbda * (255.0 ** 2) * mse_loss + bpp_loss
    return {"bpp_loss": bpp_loss, "mse_loss": mse_loss, "loss": loss}


# --------------------------------------------------------------------------- #
# Pure-JAX reference (for correctness check)
# --------------------------------------------------------------------------- #
def rate_distortion_loss_ref(output, target, lmbda=0.01):
    N, _, H, W = target.shape
    num_pixels = N * H * W
    bpp = sum(
        jnp.sum(jnp.log(lk)) / (-math.log(2) * num_pixels)
        for lk in output["likelihoods"].values()
    )
    mse = jnp.mean((output["x_hat"] - target) ** 2)
    return {
        "bpp_loss": bpp,
        "mse_loss": mse,
        "loss": lmbda * 255.0 ** 2 * mse + bpp,
    }


# --------------------------------------------------------------------------- #
# Main
# --------------------------------------------------------------------------- #
if __name__ == "__main__":
    def make_inputs(key, img_shape, lik_shapes):
        ks = jax.random.split(key, 2 + len(lik_shapes))
        target = jax.random.uniform(ks[0], img_shape, jnp.float32)
        x_hat = target + 0.05 * jax.random.normal(ks[1], img_shape, jnp.float32)
        likelihoods = {
            name: jax.random.uniform(k, shp, jnp.float32, minval=0.01, maxval=1.0)
            for (name, shp), k in zip(lik_shapes.items(), ks[2:])
        }
        return {"x_hat": x_hat, "likelihoods": likelihoods}, target

    def check(output, target, rtol):
        out = rate_distortion_loss(output, target, lmbda=0.01)
        out = jax.tree_util.tree_map(jax.block_until_ready, out)
        ref = rate_distortion_loss_ref(output, target, lmbda=0.01)
        for k in ("bpp_loss", "mse_loss", "loss"):
            assert jnp.allclose(out[k], ref[k], rtol=rtol, atol=1e-6), (
                k, out[k], ref[k])

    key = jax.random.PRNGKey(0)
    k1, k2, k3 = jax.random.split(key, 3)

    # Small shapes consistent with a compression model (primary check):
    # single-block path + fused likelihood concat with a <128-element lane pad.
    out_s, tgt_s = make_inputs(
        k1, (2, 4, 16, 16), {"y": (2, 8, 4, 4), "z": (2, 4, 2, 2)})
    check(out_s, tgt_s, rtol=1e-5)

    # Element counts not divisible by 128: exercises the no-pad (R, last_dim)
    # fallback view for both the SSE inputs and a single likelihood tensor.
    out_o, tgt_o = make_inputs(
        k2, (2, 3, 20, 20), {"y": (2, 6, 5, 5)})
    check(out_o, tgt_o, rtol=1e-5)

    # Larger shapes (~5 MiB images): exercises the multi-block grid and the
    # masked row-tail (R % tile_rows != 0) path on the SSE stream.
    out_l, tgt_l = make_inputs(
        k3, (2, 10, 256, 256), {"y": (2, 40, 64, 64), "z": (2, 10, 16, 16)})
    check(out_l, tgt_l, rtol=1e-4)

    print("KERNEL_OK")
</pallas_src>

<mosaic_0001>
module attributes {stable_mosaic.version = 11 : i64} {
  func.func @kernel(%arg0: i32, %arg1: memref<3x128xf32, #tpu.memory_space<vmem>>, %arg2: memref<1x128xf32, #tpu.memory_space<vmem>>) attributes {dimension_semantics = [#tpu.dimension_semantics<arbitrary>], iteration_bounds = array<i64: 1>, scalar_prefetch = 0 : i64, scratch_operands = 0 : i64, tpu.core_type = #tpu.core_type<tc>, window_params = [{transform_indices = @transform_0, window_bounds = array<i64: 3, 128>}, {pipeline_mode = #tpu.pipeline_mode<synchronous>, transform_indices = @transform_1, window_bounds = array<i64: 1, 128>}]} {
    %c0 = arith.constant 0 : index
    %c0_0 = arith.constant 0 : index
    %0 = vector.load %arg1[%c0, %c0_0] : memref<3x128xf32, #tpu.memory_space<vmem>>, vector<3x128xf32>
    %c0_i32 = arith.constant 0 : i32
    %1 = arith.cmpi eq, %arg0, %c0_i32 : i32
    %2 = arith.extui %1 : i1 to i32
    %c0_i32_1 = arith.constant 0 : i32
    %3 = arith.cmpi ne, %2, %c0_i32_1 : i32
    scf.if %3 {
      %cst_6 = arith.constant 0.000000e+00 : f32
      %10 = vector.broadcast %cst_6 : f32 to vector<1x128xf32>
      %c0_7 = arith.constant 0 : index
      %c0_8 = arith.constant 0 : index
      %11 = vector.load %arg2[%c0_7, %c0_8] : memref<1x128xf32, #tpu.memory_space<vmem>>, vector<1x128xf32>
      tpu.vector_store %arg2[%c0_7, %c0_8], %10 {strides = array<i32>} : memref<1x128xf32, #tpu.memory_space<vmem>>, vector<1x128xf32>,
    } else {
    }
    %c0_2 = arith.constant 0 : index
    %c0_3 = arith.constant 0 : index
    %4 = vector.load %arg2[%c0_2, %c0_3] : memref<1x128xf32, #tpu.memory_space<vmem>>, vector<1x128xf32>
    %5 = math.log %0 : vector<3x128xf32>
    %cst = arith.constant dense<0.000000e+00> : vector<128xf32>
    %6 = vector.multi_reduction <add>, %5, %cst [0] : vector<3x128xf32> to vector<128xf32>
    %7 = vector.shape_cast %6 : vector<128xf32> to vector<1x128xf32>
    %8 = arith.addf %4, %7 : vector<1x128xf32>
    %c0_4 = arith.constant 0 : index
    %c0_5 = arith.constant 0 : index
    %9 = vector.load %arg2[%c0_4, %c0_5] : memref<1x128xf32, #tpu.memory_space<vmem>>, vector<1x128xf32>
    tpu.vector_store %arg2[%c0_4, %c0_5], %8 {strides = array<i32>} : memref<1x128xf32, #tpu.memory_space<vmem>>, vector<1x128xf32>,
    return
  }
  func.func @transform_0(%arg0: i32) -> (i32, i32) {
    %c0_i32 = arith.constant 0 : i32
    %c0_i32_0 = arith.constant 0 : i32
    return %arg0, %c0_i32 : i32, i32
  }
  func.func @transform_1(%arg0: i32) -> (i32, i32) {
    %c0_i32 = arith.constant 0 : i32
    %c0_i32_0 = arith.constant 0 : i32
    %c0_i32_1 = arith.constant 0 : i32
    return %c0_i32, %c0_i32_0 : i32, i32
  }
}

</mosaic_0001>

<bundles_post_ra>
// kernel: tpu_custom_call.1
= control target key start
LH: loop header
LB: loop body
LE: loop exit
PB: predicated region body
PF: predicated region fallthrough
CT: control target
= control target key end

     0   :  { %6 = vsyncpa [#allocation3], 0  ;;  %s145_s0 = inlined_call_operand.hbm [shape: f32[3,128], index: 0, kind: input, shape index: {}]   ;;  %s146_s1 = inlined_call_operand.hbm [shape: f32[1,128], index: 1, kind: output, shape index: {}]  }
   0x1   :  { %7 = vsyncpa [#allocation4], 0  ;;  %s108_s6 = smov [#allocation2]   ;;  %s60_s10 = scalar_lea.hbm %s145_s0, 64 }
   0x2   :  { %s14_s7 = sshll.u32 %s108_s6, 4  ;;  %p61_p0 = scmp.ne.s32.totalorder %s145_s0, %s60_s10  ;;  %s15_s7 = int_to_ptr.vmem [resolvable:$true] %s14_s7 }
   0x3   :  { %p64_p1 = scmp.lt.u32.totalorder %s60_s10, %s145_s0 }
   0x5   :  { %p66_p2 = pnand %p64_p1, %p61_p0 }
   0x7   :  { %69 = shalt.err (!%p66_p2)
}
   0x8   :  { %s70_s15 = scalar_lea.vmem %s15_s7, 64  ;;  %p75_p4 = scmp.lt.s32.totalorder %s15_s7, %s15_s7 }
   0x9   :  { %p71_p3 = scmp.ne.s32.totalorder %s15_s7, %s70_s15  ;;  %p76_p5 = scmp.lt.s32.totalorder %s70_s15, %s70_s15 }
   0xb   :  { %p77_p6 = por %p76_p5, %p75_p4 }
   0xd   :  { %p78_p7 = pnand %p77_p6, %p71_p3 }
   0xf   :  { %81 = shalt.err (!%p78_p7)
}
  0x10   :  { %17 = dma.hbm_to_vmem [thread:$0]  %s145_s0, 64, %s15_s7, [#allocation3]  }
  0x11   :  { %104 = dma.done.wait [#allocation3], 64  }
  0x12   :  { %105 = vsyncadd [#allocation3], 4294967232  ;;  %v109_v0 = vmov 0.0   ;;  %v21_v1 = vld [vmem:[#allocation2] sm:$0x7]  ;;  %vm30_vm0 = vcmask 1042432  }
  0x13   :  { %26 = vst [vmem:[#allocation5] sm:$0x1] %v109_v0  ;;  %58 = vlog2.f32 %v21_v1  ;;  %s110_s18 = smov [#allocation5]  }
  0x14   :  { %s46_s19 = sshll.u32 %s110_s18, 4  ;;  %s47_s19 = int_to_ptr.vmem [resolvable:$true] %s46_s19 }
  0x15   :  { %s82_s0 = scalar_lea.vmem %s47_s19, 16  ;;  %s86_s20 = scalar_lea.vmem %s47_s19, 32 }
  0x16   :  { %p83_p8 = scmp.ne.s32.totalorder %s47_s19, %s82_s0  ;;  %p87_p9 = scmp.lt.s32.totalorder %s47_s19, %s47_s19 }
  0x17   :  { %p88_p10 = scmp.lt.s32.totalorder %s86_s20, %s82_s0 }
  0x19   :  { %p89_p11 = por %p88_p10, %p87_p9 }
  0x1a   :  { %v27_v10 = vld [vmem:[#allocation5] sm:$0x1] }
  0x1b   :  { %p90_p12 = pnand %p89_p11, %p83_p8 }
  0x1d   :  { %v59_v2 = vpop.eup %58 }
  0x1e   :  { %v29_v3 = vmul.f32 0.6931472, %v59_v2 }
  0x20   :  { %v31_v4 = vsel %vm30_vm0, %v29_v3, 0.0 }
  0x21   :  { %v32_v5 = vrot.slane %v31_v4, 4 }
  0x23   :  { %v33_v6 = vadd.f32 %v32_v5, %v31_v4 }
  0x25   :  { %v34_v7 = vrot.slane %v33_v6, 2 }
  0x27   :  { %v35_v8 = vadd.f32 %v34_v7, %v33_v6 }
  0x29   :  { %v36_v9 = vrot.slane %v35_v8, 1 }
  0x2b   :  { %v37_v11 = vadd.f32 %v36_v9, %v35_v8 }
  0x2d   :  { %v38_v12 = vadd.f32 %v37_v11, %v27_v10 }
  0x2f   :  { %39 = vst [vmem:[#allocation5] sm:$0x1] %v38_v12 }
  0x30   :  { %93 = shalt.err (!%p90_p12)
}
  0x31   :  { %s94_s23 = scalar_lea.hbm %s146_s1, 16 }
  0x32   :  { %p95_p13 = scmp.ne.s32.totalorder %s146_s1, %s94_s23  ;;  %p98_p0 = scmp.lt.u32.totalorder %s94_s23, %s146_s1 }
  0x34   :  { %p100_p1 = pnand %p98_p0, %p95_p13 }
  0x36   :  { %103 = shalt.err (!%p100_p1)
}
  0x37   :  { %49 = dma.vmem_to_hbm [thread:$0]  %s47_s19, 16, %s146_s1, [#allocation4]  }
  0x38   :  { %106 = dma.done.wait [#allocation4], 16  }
  0x39   :  { %107 = vsyncadd [#allocation4], 4294967280 }
  0x3a   :  { %53 = vsyncpa [#allocation3], 1 }
  0x3b   :  { %54 = vsyncpa [#allocation4], 1 }

</bundles_post_ra>
